<compile_context>
chip_gen: v7x
topology: tpu7x:2x2x1
jax: 0.10.0
libtpu: 0.0.40
codegen_flags: <defaults>
</compile_context>

<pallas_src>
import jax
import jax.numpy as jnp
from jax import lax
from jax.experimental import pallas as pl
from jax.experimental.pallas import tpu as pltpu

_TARGET_TILE_BYTES = 2 * 1024 * 1024     # ~2 MiB/input tile -> ~86% of HBM roofline
_PALLAS_MIN_ELEMENTS = 256 * 1024        # below this a fused XLA reduction wins
_MAX_LANE_ELEMS = 65536                  # widest row we tile without column blocking


def _cdiv(a, b):
    return -(-a // b)


def _dim_semantics(num_partitions):
    """Partition-axis semantics: CORE_PARALLEL on v7x (2 TCs) so both cores stream
    HBM; plain PARALLEL elsewhere (harmless on single-TC v5e/v6e)."""
    part = pltpu.PARALLEL
    if num_partitions > 1:
        try:
            kind = jax.devices()[0].device_kind.lower()
        except Exception:
            kind = ""
        if "v7" in kind or "7x" in kind:
            part = pltpu.CORE_PARALLEL
    return (part, pltpu.ARBITRARY)


def _sum_sq_pallas(x2, t2, w2=None):
    """sum over (R, C) of (x - t)^2, optionally * w (w shape (R, 1), f32).

    Inputs stream at their native dtype; the f32 upcast, squaring and
    accumulation happen in-kernel.  Ragged tails are masked in-kernel.
    """
    R, C = x2.shape
    itemsize = jnp.dtype(x2.dtype).itemsize
    # sublane packing: 8 rows f32, 16 bf16, 32 int8  (= 32 bytes / itemsize)
    sublane = max(8, 32 // max(1, itemsize))

    # dtype-aware row tile: ~2 MiB of native dtype per input per grid step
    tm = (_TARGET_TILE_BYTES // max(1, C * itemsize)) // sublane * sublane
    tm = max(sublane, tm)
    if tm >= R:
        tm = R                            # single row-block; full-dim block is legal

    nb = _cdiv(R, tm)                     # number of real row blocks
    P = 2 if nb >= 2 else 1               # megacore partial-sum partitions
    steps = _cdiv(nb, P)
    needs_mask = (R % tm != 0) or (P * steps != nb)
    acc_rows = 8 if tm % 8 == 0 else tm   # small accumulator; fold tile into it

    weighted = w2 is not None

    def row_map(p, i):
        # Clamp so duplicate (p, i) cells past the last real block DMA valid
        # data; their contribution is zeroed by the in-kernel row mask.
        return (jnp.minimum(p * steps + i, nb - 1), 0)

    def kernel(*refs):
        if weighted:
            x_ref, t_ref, w_ref, out_ref, acc_ref = refs
        else:
            x_ref, t_ref, out_ref, acc_ref = refs
        i = pl.program_id(1)

        @pl.when(i == 0)
        def _():
            acc_ref[...] = jnp.zeros_like(acc_ref)

        err = x_ref[...].astype(jnp.float32) - t_ref[...].astype(jnp.float32)
        sq = err * err
        if weighted:
            # (tm, 1) per-row weight broadcasts over the feature lanes (VPU).
            sq = sq * w_ref[...].astype(jnp.float32)

        if needs_mask:
            # Zero rows past R (ragged tail of the last block + clamped duplicate
            # blocks). where() also kills NaN/Inf garbage from partial-block reads.
            b = pl.program_id(0) * steps + i
            row_ids = b * tm + lax.broadcasted_iota(jnp.int32, (tm, C), 0)
            sq = jnp.where(row_ids < R, sq, 0.0)

        if tm == acc_rows:
            acc_ref[...] = acc_ref[...] + sq
        else:
            # Tree-add the tile's 8-row slabs into the small accumulator
            # (same add count as a full-tile accumulator, far less VMEM).
            acc_ref[...] = acc_ref[...] + jnp.sum(
                sq.reshape(tm // acc_rows, acc_rows, C), axis=0)

        @pl.when(i == steps - 1)
        def _():
            # Single cross-lane/sublane reduce per partition, broadcast over lanes.
            out_ref[...] = jnp.zeros(out_ref.shape, jnp.float32) + jnp.sum(acc_ref[...])

    in_specs = [pl.BlockSpec((tm, C), row_map),
                pl.BlockSpec((tm, C), row_map)]
    operands = [x2, t2]
    if weighted:
        in_specs.append(pl.BlockSpec((tm, 1), row_map))
        operands.append(w2)

    out = pl.pallas_call(
        kernel,
        out_shape=jax.ShapeDtypeStruct((1, P * 128), jnp.float32),
        grid_spec=pltpu.PrefetchScalarGridSpec(
            num_scalar_prefetch=0,
            grid=(P, steps),
            in_specs=in_specs,
            out_specs=pl.BlockSpec((1, 128), lambda p, i: (0, p)),
            scratch_shapes=[pltpu.VMEM((acc_rows, C), jnp.float32)],
        ),
        compiler_params=pltpu.CompilerParams(
            dimension_semantics=_dim_semantics(P),
            vmem_limit_bytes=32 * 1024 * 1024),
    )(*operands)
    return jnp.sum(out.reshape(P, 128)[:, 0])


# --------------------------- wrappers ---------------------------------------

def _mse_mean_xla(x, t):
    return jnp.mean((x.astype(jnp.float32) - t.astype(jnp.float32)) ** 2)


def _wmse_mean_xla(x2, t2, w2):
    err = x2.astype(jnp.float32) - t2.astype(jnp.float32)
    return jnp.mean(err * err * w2)


def _mse_mean(x, t, use_pallas):
    count = x.size
    if (not use_pallas) or x.ndim == 0 or count == 0:
        return _mse_mean_xla(x, t)
    # Lane-dense flattened view when the element count allows it (free reshape,
    # no copy); otherwise the natural (rows, last-dim) layout (also no copy).
    lanes = None
    for cand in (512, 256, 128):
        if count % cand == 0:
            lanes = cand
            break
    if lanes is not None:
        x2 = x.reshape(count // lanes, lanes)
        t2 = t.reshape(count // lanes, lanes)
    else:
        C = x.shape[-1]
        x2 = x.reshape(-1, C)
        t2 = t.reshape(-1, C)
    R, C = x2.shape
    if R == 0 or C == 0 or C > _MAX_LANE_ELEMS:
        # TODO(synk): add column tiling for extremely wide rows; XLA handles it fine.
        return _mse_mean_xla(x, t)
    return _sum_sq_pallas(x2, t2) / jnp.float32(count)


def _weighted_mse_mean(x, t, w, use_pallas):
    N = x.shape[0]
    x2 = x.reshape(N, -1)
    t2 = t.reshape(N, -1)
    w2 = w.reshape(N, 1).astype(jnp.float32)
    count = x.size
    R, C = x2.shape
    if (not use_pallas) or R == 0 or C == 0 or C > _MAX_LANE_ELEMS:
        return _wmse_mean_xla(x2, t2, w2)
    # TODO(synk): for D in {32, 64} fold 128/D rows into the lane axis (expanding
    # the weight tile on the idle XLU) if the contiguous row-tile DMA ever falls
    # off the HBM roofline.
    return _sum_sq_pallas(x2, t2, w2) / jnp.float32(count)


def custom_mse_loss(inp, target, data_dist=None, *,
                    min_pallas_elements=_PALLAS_MIN_ELEMENTS):
    """Mirrors CustomMSELoss.forward.

    data_dist, if given, is (labels, class_counts, scale):
      normalized_dist = scale * (class_counts / max(class_counts))
      weight_i        = normalized_dist[labels_i]
      loss            = mean(weight[:, None] * (input - target)^2)
    otherwise loss = mean((input - target)^2).
    Inputs below `min_pallas_elements` use a fused XLA reduction directly.
    """
    use_pallas = inp.size >= min_pallas_elements
    if data_dist is not None:
        labels, class_counts, scale = data_dist
        class_counts = jnp.asarray(class_counts, jnp.float32)
        normalized = jnp.float32(scale) * (class_counts / jnp.max(class_counts))
        weights = normalized[jnp.asarray(labels, jnp.int32)]
        return _weighted_mse_mean(inp, target, weights, use_pallas)
    return _mse_mean(inp, target, use_pallas)


if __name__ == "__main__":
    key = jax.random.PRNGKey(0)
    k1, k2, k3, k4, k5, k6, k7, k8, k9, k10 = jax.random.split(key, 10)

    NUM_CLASSES = 4
    class_counts = [5.0, 3.0, 7.0, 1.0]   # data_dist[1]
    scale = 2.0                            # data_dist[2]
    counts = jnp.asarray(class_counts, jnp.float32)
    norm = scale * counts / jnp.max(counts)

    # ---- small demo shapes (batch=16, hidden=32); force the Pallas path ----
    N, D = 16, 32
    x = jax.random.normal(k1, (N, D), dtype=jnp.float32)
    t = jax.random.normal(k2, (N, D), dtype=jnp.float32)
    labels = jax.random.randint(k3, (N,), 0, NUM_CLASSES)

    loss_plain = custom_mse_loss(x, t, min_pallas_elements=0)
    jax.block_until_ready(loss_plain)
    assert jnp.allclose(loss_plain, jnp.mean((x - t) ** 2), rtol=1e-5, atol=1e-6)

    loss_w = custom_mse_loss(x, t, data_dist=(labels, class_counts, scale),
                             min_pallas_elements=0)
    jax.block_until_ready(loss_w)
    ref_w = jnp.mean(((x - t) ** 2) * norm[labels][:, None])
    assert jnp.allclose(loss_w, ref_w, rtol=1e-5, atol=1e-6)

    # ---- ragged small shapes (not multiples of 8/128) ----
    Nr, Dr = 19, 48
    xr = jax.random.normal(k4, (Nr, Dr), dtype=jnp.float32)
    tr = jax.random.normal(k5, (Nr, Dr), dtype=jnp.float32)
    labels_r = jax.random.randint(k6, (Nr,), 0, NUM_CLASSES)

    loss_r = custom_mse_loss(xr, tr, min_pallas_elements=0)
    jax.block_until_ready(loss_r)
    assert jnp.allclose(loss_r, jnp.mean((xr - tr) ** 2), rtol=1e-5, atol=1e-6)

    loss_rw = custom_mse_loss(xr, tr, data_dist=(labels_r, class_counts, scale),
                              min_pallas_elements=0)
    jax.block_until_ready(loss_rw)
    ref_rw = jnp.mean(((xr - tr) ** 2) * norm[labels_r][:, None])
    assert jnp.allclose(loss_rw, ref_rw, rtol=1e-5, atol=1e-6)

    # ---- bf16 inputs stream at native width (upcast happens in-kernel) ----
    xb = x.astype(jnp.bfloat16)
    tb = t.astype(jnp.bfloat16)
    loss_b = custom_mse_loss(xb, tb, min_pallas_elements=0)
    jax.block_until_ready(loss_b)
    ref_b = jnp.mean((xb.astype(jnp.float32) - tb.astype(jnp.float32)) ** 2)
    assert jnp.allclose(loss_b, ref_b, rtol=1e-3, atol=1e-4)

    # ---- medium checks exercising tail masking, block clamping, megacore
    #      partitions and the (8, C) accumulator fold ----
    Mr, Mc = 4109, 512      # nb=5, P=2, steps=3 -> masked + clamped blocks
    xm = jax.random.normal(k7, (Mr, Mc), dtype=jnp.float32)
    tm_ = jax.random.normal(k8, (Mr, Mc), dtype=jnp.float32)
    loss_m = custom_mse_loss(xm, tm_)
    jax.block_until_ready(loss_m)
    assert jnp.allclose(loss_m, jnp.mean((xm - tm_) ** 2), rtol=2e-4, atol=1e-6)

    Wr, Wc = 2100, 512      # weighted path with ragged tail + partitions
    xw = jax.random.normal(k9, (Wr, Wc), dtype=jnp.float32)
    tw = jax.random.normal(k10, (Wr, Wc), dtype=jnp.float32)
    labels_w = jax.random.randint(k3, (Wr,), 0, NUM_CLASSES)
    loss_mw = custom_mse_loss(xw, tw, data_dist=(labels_w, class_counts, scale))
    jax.block_until_ready(loss_mw)
    ref_mw = jnp.mean(((xw - tw) ** 2) * norm[labels_w][:, None])
    assert jnp.allclose(loss_mw, ref_mw, rtol=2e-4, atol=1e-6)

    print("KERNEL_OK")
</pallas_src>

<mosaic_0001>
module attributes {stable_mosaic.version = 11 : i64} {
  func.func @kernel(%arg0: i32, %arg1: i32, %arg2: memref<1x512xf32, #tpu.memory_space<vmem>>, %arg3: memref<1x512xf32, #tpu.memory_space<vmem>>, %arg4: memref<1x128xf32, #tpu.memory_space<vmem>>, %arg5: memref<1x512xf32, #tpu.memory_space<vmem>>) attributes {dimension_semantics = [#tpu.dimension_semantics<parallel>, #tpu.dimension_semantics<arbitrary>], iteration_bounds = array<i64: 1, 1>, scalar_prefetch = 0 : i64, scratch_operands = 1 : i64, tpu.core_type = #tpu.core_type<tc>, window_params = [{transform_indices = @transform_0, window_bounds = array<i64: 1, 512>}, {transform_indices = @transform_1, window_bounds = array<i64: 1, 512>}, {transform_indices = @transform_2, window_bounds = array<i64: 1, 128>}]} {
    %c0_i32 = arith.constant 0 : i32
    %0 = arith.cmpi eq, %arg1, %c0_i32 : i32
    %1 = arith.extui %0 : i1 to i32
    %c0_i32_0 = arith.constant 0 : i32
    %2 = arith.cmpi ne, %1, %c0_i32_0 : i32
    scf.if %2 {
      %cst = arith.constant 0.000000e+00 : f32
      %13 = vector.broadcast %cst : f32 to vector<1x512xf32>
      %c0_10 = arith.constant 0 : index
      %c0_11 = arith.constant 0 : index
      %14 = vector.load %arg5[%c0_10, %c0_11] : memref<1x512xf32, #tpu.memory_space<vmem>>, vector<1x512xf32>
      tpu.vector_store %arg5[%c0_10, %c0_11], %13 {strides = array<i32>} : memref<1x512xf32, #tpu.memory_space<vmem>>, vector<1x512xf32>,
    } else {
    }
    %c0 = arith.constant 0 : index
    %c0_1 = arith.constant 0 : index
    %3 = vector.load %arg2[%c0, %c0_1] : memref<1x512xf32, #tpu.memory_space<vmem>>, vector<1x512xf32>
    %c0_2 = arith.constant 0 : index
    %c0_3 = arith.constant 0 : index
    %4 = vector.load %arg3[%c0_2, %c0_3] : memref<1x512xf32, #tpu.memory_space<vmem>>, vector<1x512xf32>
    %5 = arith.subf %3, %4 : vector<1x512xf32>
    %6 = arith.mulf %5, %5 : vector<1x512xf32>
    %c0_4 = arith.constant 0 : index
    %c0_5 = arith.constant 0 : index
    %7 = vector.load %arg5[%c0_4, %c0_5] : memref<1x512xf32, #tpu.memory_space<vmem>>, vector<1x512xf32>
    %8 = arith.addf %7, %6 : vector<1x512xf32>
    %c0_6 = arith.constant 0 : index
    %c0_7 = arith.constant 0 : index
    %9 = vector.load %arg5[%c0_6, %c0_7] : memref<1x512xf32, #tpu.memory_space<vmem>>, vector<1x512xf32>
    tpu.vector_store %arg5[%c0_6, %c0_7], %8 {strides = array<i32>} : memref<1x512xf32, #tpu.memory_space<vmem>>, vector<1x512xf32>,
    %c0_i32_8 = arith.constant 0 : i32
    %10 = arith.cmpi eq, %arg1, %c0_i32_8 : i32
    %11 = arith.extui %10 : i1 to i32
    %c0_i32_9 = arith.constant 0 : i32
    %12 = arith.cmpi ne, %11, %c0_i32_9 : i32
    scf.if %12 {
      %cst = arith.constant 0.000000e+00 : f32
      %13 = vector.broadcast %cst : f32 to vector<1x128xf32>
      %c0_10 = arith.constant 0 : index
      %c0_11 = arith.constant 0 : index
      %14 = vector.load %arg5[%c0_10, %c0_11] : memref<1x512xf32, #tpu.memory_space<vmem>>, vector<1x512xf32>
      %15 = vector.shape_cast %14 : vector<1x512xf32> to vector<1x1x512xf32>
      %cst_12 = arith.constant dense<0.000000e+00> : vector<1xf32>
      %16 = vector.multi_reduction <add>, %15, %cst_12 [1, 2] : vector<1x1x512xf32> to vector<1xf32>
      %17 = vector.shape_cast %16 : vector<1xf32> to vector<1x1x1xf32>
      %18 = vector.extract %17[0, 0, 0] : f32 from vector<1x1x1xf32>
      %19 = vector.broadcast %18 : f32 to vector<1x128xf32>
      %20 = arith.addf %13, %19 : vector<1x128xf32>
      %c0_13 = arith.constant 0 : index
      %c0_14 = arith.constant 0 : index
      %21 = vector.load %arg4[%c0_13, %c0_14] : memref<1x128xf32, #tpu.memory_space<vmem>>, vector<1x128xf32>
      tpu.vector_store %arg4[%c0_13, %c0_14], %20 {strides = array<i32>} : memref<1x128xf32, #tpu.memory_space<vmem>>, vector<1x128xf32>,
    } else {
    }
    return
  }
  func.func @transform_0(%arg0: i32, %arg1: i32) -> (i32, i32) {
    %c1_i32 = arith.constant 1 : i32
    %0 = arith.muli %arg0, %c1_i32 : i32
    %1 = arith.addi %0, %arg1 : i32
    %c0_i32 = arith.constant 0 : i32
    %2 = arith.minsi %1, %c0_i32 : i32
    %c0_i32_0 = arith.constant 0 : i32
    %c0_i32_1 = arith.constant 0 : i32
    return %2, %c0_i32_0 : i32, i32
  }
  func.func @transform_1(%arg0: i32, %arg1: i32) -> (i32, i32) {
    %c1_i32 = arith.constant 1 : i32
    %0 = arith.muli %arg0, %c1_i32 : i32
    %1 = arith.addi %0, %arg1 : i32
    %c0_i32 = arith.constant 0 : i32
    %2 = arith.minsi %1, %c0_i32 : i32
    %c0_i32_0 = arith.constant 0 : i32
    %c0_i32_1 = arith.constant 0 : i32
    return %2, %c0_i32_0 : i32, i32
  }
  func.func @transform_2(%arg0: i32, %arg1: i32) -> (i32, i32) {
    %c0_i32 = arith.constant 0 : i32
    %c0_i32_0 = arith.constant 0 : i32
    return %c0_i32, %arg0 : i32, i32
  }
}

</mosaic_0001>

<bundles_post_ra>
// kernel: tpu_custom_call.1
= control target key start
LH: loop header
LB: loop body
LE: loop exit
PB: predicated region body
PF: predicated region fallthrough
CT: control target
= control target key end

     0   :  { %7 = vsyncpa [#allocation4], 0  ;;  %s272_s0 = inlined_call_operand.hbm [shape: f32[1,512], index: 0, kind: input, shape index: {}]   ;;  %s273_s1 = inlined_call_operand.hbm [shape: f32[1,512], index: 1, kind: input, shape index: {}]   ;;  %s274_s2 = inlined_call_operand.hbm [shape: f32[1,128], index: 2, kind: output, shape index: {}]  }
   0x1   :  { %8 = vsyncpa [#allocation7], 0 }
   0x2   :  { %9 = vsyncpa [#allocation5], 0  ;;  %s217_s9 = smov [#allocation3]   ;;  %s218_s11 = smov [#allocation6]  }
   0x3   :  { %s22_s10 = sshll.u32 %s217_s9, 4  ;;  %s38_s12 = sshll.u32 %s218_s11, 4  ;;  %s23_s10 = int_to_ptr.vmem [resolvable:$true] %s22_s10  ;;  %s39_s12 = int_to_ptr.vmem [resolvable:$true] %s38_s12 }
   0x4   :  { %s145_s15 = scalar_lea.hbm %s272_s0, 64 }
   0x5   :  { %p146_p0 = scmp.ne.s32.totalorder %s272_s0, %s145_s15  ;;  %p149_p1 = scmp.lt.u32.totalorder %s145_s15, %s272_s0 }
   0x7   :  { %p151_p2 = pnand %p149_p1, %p146_p0 }
   0x9   :  { %154 = shalt.err (!%p151_p2)
}
   0xa   :  { %s155_s20 = scalar_lea.vmem %s23_s10, 64  ;;  %p160_p4 = scmp.lt.s32.totalorder %s23_s10, %s23_s10 }
   0xb   :  { %p156_p3 = scmp.ne.s32.totalorder %s23_s10, %s155_s20  ;;  %p161_p5 = scmp.lt.s32.totalorder %s155_s20, %s155_s20 }
   0xd   :  { %p162_p6 = por %p161_p5, %p160_p4 }
   0xf   :  { %p163_p7 = pnand %p162_p6, %p156_p3 }
  0x11   :  { %166 = shalt.err (!%p163_p7)
}
  0x12   :  { %25 = dma.hbm_to_vmem [thread:$0]  %s272_s0, 64, %s23_s10, [#allocation4]  }
  0x13   :  { %s167_s25 = scalar_lea.hbm %s273_s1, 64 }
  0x14   :  { %p168_p8 = scmp.ne.s32.totalorder %s273_s1, %s167_s25  ;;  %p171_p9 = scmp.lt.u32.totalorder %s167_s25, %s273_s1 }
  0x16   :  { %p173_p10 = pnand %p171_p9, %p168_p8 }
  0x18   :  { %176 = shalt.err (!%p173_p10)
}
  0x19   :  { %s177_s30 = scalar_lea.vmem %s39_s12, 64  ;;  %p182_p12 = scmp.lt.s32.totalorder %s39_s12, %s39_s12 }
  0x1a   :  { %p178_p11 = scmp.ne.s32.totalorder %s39_s12, %s177_s30  ;;  %p183_p13 = scmp.lt.s32.totalorder %s177_s30, %s177_s30 }
  0x1c   :  { %p184_p0 = por %p183_p13, %p182_p12 }
  0x1e   :  { %p185_p1 = pnand %p184_p0, %p178_p11 }
  0x20   :  { %188 = shalt.err (!%p185_p1)
}
  0x21   :  { %41 = dma.hbm_to_vmem [thread:$0]  %s273_s1, 64, %s39_s12, [#allocation7]  }
  0x22   :  { %211 = dma.done.wait [#allocation4], 64  }
  0x23   :  { %212 = vsyncadd [#allocation4], 4294967232 }
  0x24   :  { %213 = dma.done.wait [#allocation7], 64  }
  0x25   :  { %214 = vsyncadd [#allocation7], 4294967232  ;;  %v58_v0 = vlaneseq  ;;  %v219_v1 = vmov 0.0   ;;  %v63_v2 = vld [vmem:[#allocation3] sm:$0xf]  ;;  %vm99_vm1 = vcmask 1040384  }
  0x26   :  { %v64_v3 = vld [vmem:[#allocation6] sm:$0xf]  ;;  %s220_s1 = smov [#allocation8]  }
  0x27   :  { %vm60_vm0 = vcmp.lt.s32.totalorder %v58_v0, 512  ;;  %v65_v4 = vsub.f32 %v63_v2, %v64_v3  ;;  %v80_v8 = vshrl.u32 %v58_v0, 7  ;;  %s125_s4 = sshll.u32 %s220_s1, 4  ;;  %s126_s4 = int_to_ptr.vmem [resolvable:$true] %s125_s4 }
  0x28   :  { %62 = vst.msk [vmem:[#allocation2] sm:$0xf] %vm60_vm0, %v219_v1  ;;  %s189_s6 = scalar_lea.vmem %s126_s4, 16  ;;  %s193_s7 = scalar_lea.vmem %s126_s4, 32 }
  0x29   :  { %v66_v5 = vmul.f32 %v65_v4, %v65_v4  ;;  %v81_v9 = vsub.s32 0, %v80_v8  ;;  %v85_v10 = vsub.s32 1, %v80_v8  ;;  %v89_v11 = vsub.s32 2, %v80_v8  ;;  %p190_p2 = scmp.ne.s32.totalorder %s126_s4, %s189_s6  ;;  %p194_p3 = scmp.lt.s32.totalorder %s126_s4, %s126_s4 }
  0x2a   :  { %v93_v12 = vsub.s32 3, %v80_v8  ;;  %p195_p4 = scmp.lt.s32.totalorder %s193_s7, %s189_s6 }
  0x2c   :  { %p196_p5 = por %p195_p4, %p194_p3 }
  0x2e   :  { %p197_p6 = pnand %p196_p5, %p190_p2 }
  0x2f   :  { %v67_v6 = vld [vmem:[#allocation2] sm:$0xf] }
  0x30   :  { %v68_v7 = vadd.f32 %v67_v6, %v66_v5 }
  0x32   :  { %73 = vst.msk [vmem:[#allocation2] sm:$0xf] %vm60_vm0, %v68_v7 }
  0x39   :  { %v77_v13 = vld [vmem:[#allocation2] sm:$0xf] }
  0x3a   :  { %v82_v14 = vrot.slane %v77_v13, %v81_v9  ;;  %v86_v15 = vrot.slane %v77_v13, %v85_v10  ;;  %v90_v16 = vrot.slane %v77_v13, %v89_v11  ;;  %v94_v17 = vrot.slane %v77_v13, %v93_v12 }
  0x3c   :  { %v100_v18 = vsel %vm99_vm1, %v82_v14, 0.0  ;;  %v101_v19 = vsel %vm99_vm1, %v86_v15, 0.0  ;;  %v103_v20 = vsel %vm99_vm1, %v90_v16, 0.0  ;;  %v105_v22 = vsel %vm99_vm1, %v94_v17, 0.0 }
  0x3d   :  { %v102_v21 = vadd.f32 %v101_v19, %v100_v18 }
  0x3f   :  { %v104_v23 = vadd.f32 %v103_v20, %v102_v21 }
  0x41   :  { %v106_v24 = vadd.f32 %v105_v22, %v104_v23 }
  0x43   :  { %107 = vadd.xlane.f32.xlu0 %v106_v24 }
  0xd0   :  { %v108_v25 = vpop.xlane.xlu0 %107 }
  0xd1   :  { %v109_v26 = vrot.slane %v108_v25, 4 }
  0xd3   :  { %v110_v27 = vadd.f32 %v109_v26, %v108_v25 }
  0xd5   :  { %v111_v28 = vrot.slane %v110_v27, 2 }
  0xd7   :  { %v112_v29 = vadd.f32 %v111_v28, %v110_v27 }
  0xd9   :  { %v113_v30 = vrot.slane %v112_v29, 1 }
  0xdb   :  { %v114_v31 = vadd.f32 %v113_v30, %v112_v29 }
  0xdd   :  { %139 = vpush %v114_v31 }
 0x10e   :  { %s140_s5 = spop %139 }
 0x10f   :  { %v116_v32 = vstv %s140_s5 }
 0x110   :  { %118 = vst [vmem:[#allocation8] sm:$0x1] %v116_v32 }
 0x111   :  { %200 = shalt.err (!%p197_p6)
}
 0x112   :  { %s201_s10 = scalar_lea.hbm %s274_s2, 16 }
 0x113   :  { %p202_p7 = scmp.ne.s32.totalorder %s274_s2, %s201_s10  ;;  %p205_p8 = scmp.lt.u32.totalorder %s201_s10, %s274_s2 }
 0x115   :  { %p207_p9 = pnand %p205_p8, %p202_p7 }
 0x117   :  { %210 = shalt.err (!%p207_p9)
}
 0x118   :  { %128 = dma.vmem_to_hbm [thread:$0]  %s126_s4, 16, %s274_s2, [#allocation5]  }
 0x119   :  { %215 = dma.done.wait [#allocation5], 16  }
 0x11a   :  { %216 = vsyncadd [#allocation5], 4294967280 }
 0x11b   :  { %132 = vsyncpa [#allocation4], 1 }
 0x11c   :  { %133 = vsyncpa [#allocation7], 1 }
 0x11d   :  { %134 = vsyncpa [#allocation5], 1 }

</bundles_post_ra>
